<compile_context>
chip_gen: v5e
topology: v5e:2x2
jax: 0.10.0
libtpu: 0.0.40
codegen_flags: <defaults>
</compile_context>

<pallas_src>
import functools

import jax
import jax.numpy as jnp
from jax import lax
from jax.experimental import pallas as pl
from jax.experimental.pallas import tpu as pltpu


def _decoder_conv_kernel(masks_ref, x_ref, w1_ref, w2_ref, o_ref,
                         *, H, W, B, compute_dtype):
    # masks_ref: (9, B*HW)        per-tap zero-padding masks (compute_dtype 0/1)
    # x_ref    : (1, Cin, B*HW)   input slab, channels-first, flat spatial (compute_dtype)
    # w1_ref   : (Cout, 9*Cin+1)  conv1 weights + bias column (compute_dtype)
    # w2_ref   : (Cout, 9*Cout+1) conv2 weights + bias column (compute_dtype)
    # o_ref    : (1, Cout, B*HW)  output, lane-dense last dim
    HW = H * W
    BHW = B * HW

    masks = masks_ref[...]                          # (9, BHW)
    ones_row = jnp.ones((1, BHW), compute_dtype)    # bias row (built once)

    def taps_stack(img):
        # img: (C, BHW) compute_dtype -> (9*C + 1, BHW) stacked taps + ones row.
        # tap[t] = roll(img, +s) masked to zero where the source pixel falls
        # outside its own HxW image (implements pad=1; also kills cross-image
        # reads now that batch is folded into the lane axis).
        blocks = []
        for ky in range(3):
            for kx in range(3):
                t = ky * 3 + kx
                s = (ky - 1) * W + (kx - 1)
                tap = img if s == 0 else pltpu.roll(img, shift=(-s) % BHW, axis=1)
                if not (ky == 1 and kx == 1):        # centre tap needs no mask
                    tap = tap * masks[t:t + 1, :]
                blocks.append(tap)
        blocks.append(ones_row)
        return jnp.concatenate(blocks, axis=0)

    def conv3x3_bias_relu(img, w_ref):
        # Single fused MXU dot: (Cout, 9C+1) x (9C+1, BHW) -> (Cout, BHW) f32.
        y = jnp.dot(w_ref[...], taps_stack(img),
                    preferred_element_type=jnp.float32)
        return jnp.maximum(y, 0.0)

    x = x_ref[0]                                     # (Cin, BHW), already compute_dtype
    a1 = conv3x3_bias_relu(x, w1_ref)                # f32, stays in vregs
    a2 = conv3x3_bias_relu(a1.astype(compute_dtype), w2_ref)
    o_ref[0] = a2.astype(o_ref.dtype)                # unmasked, lane-dense stores


def _pick_images_per_block(n, hw, lane_budget=2048):
    """Largest divisor B of n with B*hw <= lane_budget, keeping >=2 grid steps
    when n >= 2 (v7x has 2 TensorCores that only see work if grid length >= 2)."""
    best = 1
    for b in range(1, n + 1):
        if n % b != 0:
            continue
        if b * hw > lane_budget:
            continue
        if n // b < min(2, n):
            continue
        best = b
    return best


@functools.partial(jax.jit, static_argnames=("compute_dtype",))
def decoder_conv_forward(x_nchw, w1_pt, b1, w2_pt, b2,
                         compute_dtype=jnp.bfloat16):
    """Forward pass of decoder_conv.

    x_nchw : (N, Cin, H, W)      float32  (PyTorch NCHW)
    w1_pt  : (Cout, Cin, 3, 3)   float32  (PyTorch conv weight layout)
    b1     : (Cout,)
    w2_pt  : (Cout, Cout, 3, 3)
    b2     : (Cout,)
    returns: (N, Cout, H, W)     float32
    """
    N, Cin, H, W = x_nchw.shape
    Cout = w1_pt.shape[0]
    HW = H * W
    B = _pick_images_per_block(N, HW)
    G = N // B
    BHW = B * HW

    # --- inputs: fold B images per block into the lane axis, cast once. -------
    x_blocks = (x_nchw.reshape(G, B, Cin, HW)
                .transpose(0, 2, 1, 3)
                .reshape(G, Cin, BHW)
                .astype(compute_dtype))

    # --- weights: repack to 2-D (Cout, 9*C) with the bias as an extra column. -
    # Column order (ky*3+kx)*C + c matches the kernel's tap-stack row order.
    w1_2d = jnp.transpose(w1_pt, (0, 2, 3, 1)).reshape(Cout, 9 * Cin)
    w1_fused = jnp.concatenate([w1_2d, b1.reshape(Cout, 1)], axis=1).astype(compute_dtype)
    w2_2d = jnp.transpose(w2_pt, (0, 2, 3, 1)).reshape(Cout, 9 * Cout)
    w2_fused = jnp.concatenate([w2_2d, b2.reshape(Cout, 1)], axis=1).astype(compute_dtype)

    # --- zero-padding masks, precomputed per tap (constant, tiled over B). ----
    yy = jnp.arange(HW, dtype=jnp.int32) // W
    xx = jnp.arange(HW, dtype=jnp.int32) % W
    rows = []
    for ky in range(3):
        for kx in range(3):
            sy, sx = ky - 1, kx - 1
            valid = jnp.ones((HW,), jnp.bool_)
            if sy < 0:
                valid &= yy >= 1
            if sy > 0:
                valid &= yy <= H - 2
            if sx < 0:
                valid &= xx >= 1
            if sx > 0:
                valid &= xx <= W - 2
            rows.append(valid)
    masks = jnp.tile(jnp.stack(rows, axis=0).astype(compute_dtype), (1, B))  # (9, BHW)

    kernel = functools.partial(_decoder_conv_kernel,
                               H=H, W=W, B=B, compute_dtype=compute_dtype)

    out_blocks = pl.pallas_call(
        kernel,
        out_shape=jax.ShapeDtypeStruct((G, Cout, BHW), x_nchw.dtype),
        grid_spec=pltpu.PrefetchScalarGridSpec(
            num_scalar_prefetch=0,
            grid=(G,),
            in_specs=[
                pl.BlockSpec((9, BHW), lambda g: (0, 0)),
                pl.BlockSpec((1, Cin, BHW), lambda g: (g, 0, 0)),
                pl.BlockSpec((Cout, 9 * Cin + 1), lambda g: (0, 0)),
                pl.BlockSpec((Cout, 9 * Cout + 1), lambda g: (0, 0)),
            ],
            out_specs=pl.BlockSpec((1, Cout, BHW), lambda g: (g, 0, 0)),
        ),
        compiler_params=pltpu.CompilerParams(
            dimension_semantics=("parallel",)),
    )(masks, x_blocks, w1_fused, w2_fused)

    return (out_blocks.reshape(G, Cout, B, HW)
            .transpose(0, 2, 1, 3)
            .reshape(N, Cout, H, W))


def _reference_forward(x_nchw, w1_pt, b1, w2_pt, b2):
    """Pure-JAX reference (mirrors torch.nn.Conv2d + ReLU semantics)."""
    dn = lax.conv_dimension_numbers(x_nchw.shape, w1_pt.shape,
                                    ("NCHW", "OIHW", "NCHW"))
    out = lax.conv_general_dilated(x_nchw, w1_pt, (1, 1), ((1, 1), (1, 1)),
                                   dimension_numbers=dn)
    out = jnp.maximum(out + b1[None, :, None, None], 0.0)
    out = lax.conv_general_dilated(out, w2_pt, (1, 1), ((1, 1), (1, 1)),
                                   dimension_numbers=dn)
    out = jnp.maximum(out + b2[None, :, None, None], 0.0)
    return out


if __name__ == "__main__":
    # Small deterministic shapes: batch=2, in_channels=4, out_channels=8, 16x16.
    N, Cin, Cout, H, W = 2, 4, 8, 16, 16

    key = jax.random.PRNGKey(0)
    kx_, kw1, kb1, kw2, kb2 = jax.random.split(key, 5)

    x = jax.random.normal(kx_, (N, Cin, H, W), jnp.float32)
    w1 = 0.1 * jax.random.normal(kw1, (Cout, Cin, 3, 3), jnp.float32)
    b1 = 0.1 * jax.random.normal(kb1, (Cout,), jnp.float32)
    w2 = 0.1 * jax.random.normal(kw2, (Cout, Cout, 3, 3), jnp.float32)
    b2 = 0.1 * jax.random.normal(kb2, (Cout,), jnp.float32)

    ref = jax.block_until_ready(_reference_forward(x, w1, b1, w2, b2))

    # 1) Structural correctness: full-f32 MXU path, tight tolerance.
    out_f32 = jax.block_until_ready(
        decoder_conv_forward(x, w1, b1, w2, b2, compute_dtype=jnp.float32))
    assert out_f32.shape == (N, Cout, H, W)
    assert jnp.allclose(out_f32, ref, atol=1e-4, rtol=1e-4), "f32 mismatch vs reference"

    # 2) Fast path: bf16 into the MXU, f32 accumulation / bias-fold / ReLU.
    out_bf16 = jax.block_until_ready(decoder_conv_forward(x, w1, b1, w2, b2))
    assert out_bf16.shape == (N, Cout, H, W)
    assert jnp.allclose(out_bf16, ref, atol=5e-2, rtol=5e-2), "bf16 mismatch vs reference"

    print("KERNEL_OK")
</pallas_src>

<mosaic_0001>
module attributes {stable_mosaic.version = 11 : i64} {
  func.func @_decoder_conv_kernel(%arg0: i32, %arg1: memref<9x256xf32, #tpu.memory_space<vmem>>, %arg2: memref<1x4x256xf32, #tpu.memory_space<vmem>>, %arg3: memref<8x37xf32, #tpu.memory_space<vmem>>, %arg4: memref<8x73xf32, #tpu.memory_space<vmem>>, %arg5: memref<1x8x256xf32, #tpu.memory_space<vmem>>) attributes {dimension_semantics = [#tpu.dimension_semantics<parallel>], iteration_bounds = array<i64: 2>, scalar_prefetch = 0 : i64, scratch_operands = 0 : i64, tpu.core_type = #tpu.core_type<tc>, window_params = [{pipeline_mode = #tpu.pipeline_mode<synchronous>, transform_indices = @transform_0, window_bounds = array<i64: 9, 256>}, {transform_indices = @transform_1, window_bounds = array<i64: 1, 4, 256>}, {pipeline_mode = #tpu.pipeline_mode<synchronous>, transform_indices = @transform_2, window_bounds = array<i64: 8, 37>}, {pipeline_mode = #tpu.pipeline_mode<synchronous>, transform_indices = @transform_3, window_bounds = array<i64: 8, 73>}, {transform_indices = @transform_4, window_bounds = array<i64: 1, 8, 256>}]} {
    %c0 = arith.constant 0 : index
    %c0_0 = arith.constant 0 : index
    %0 = vector.load %arg1[%c0, %c0_0] : memref<9x256xf32, #tpu.memory_space<vmem>>, vector<9x256xf32>
    %cst = arith.constant 1.000000e+00 : f32
    %1 = vector.broadcast %cst : f32 to vector<1x256xf32>
    %c0_1 = arith.constant 0 : index
    %c0_2 = arith.constant 0 : index
    %c0_3 = arith.constant 0 : index
    %2 = vector.load %arg2[%c0_1, %c0_2, %c0_3] : memref<1x4x256xf32, #tpu.memory_space<vmem>>, vector<1x4x256xf32>
    %3 = vector.shape_cast %2 : vector<1x4x256xf32> to vector<4x256xf32>
    %c0_4 = arith.constant 0 : index
    %c0_5 = arith.constant 0 : index
    %4 = vector.load %arg3[%c0_4, %c0_5] : memref<8x37xf32, #tpu.memory_space<vmem>>, vector<8x37xf32>
    %c17_i32 = arith.constant 17 : i32
    %5 = tpu.dynamic_rotate %3 by %c17_i32 dim 1 : vector<4x256xf32>, i32 -> vector<4x256xf32>
    %6 = vector.extract_strided_slice %0 {offsets = [0, 0], sizes = [1, 256], strides = [1, 1]} : vector<9x256xf32> to vector<1x256xf32>
    %7 = vector.broadcast %6 : vector<1x256xf32> to vector<4x256xf32>
    %8 = arith.mulf %5, %7 : vector<4x256xf32>
    %c16_i32 = arith.constant 16 : i32
    %9 = tpu.dynamic_rotate %3 by %c16_i32 dim 1 : vector<4x256xf32>, i32 -> vector<4x256xf32>
    %10 = vector.extract_strided_slice %0 {offsets = [1, 0], sizes = [1, 256], strides = [1, 1]} : vector<9x256xf32> to vector<1x256xf32>
    %11 = vector.broadcast %10 : vector<1x256xf32> to vector<4x256xf32>
    %12 = arith.mulf %9, %11 : vector<4x256xf32>
    %c15_i32 = arith.constant 15 : i32
    %13 = tpu.dynamic_rotate %3 by %c15_i32 dim 1 : vector<4x256xf32>, i32 -> vector<4x256xf32>
    %14 = vector.extract_strided_slice %0 {offsets = [2, 0], sizes = [1, 256], strides = [1, 1]} : vector<9x256xf32> to vector<1x256xf32>
    %15 = vector.broadcast %14 : vector<1x256xf32> to vector<4x256xf32>
    %16 = arith.mulf %13, %15 : vector<4x256xf32>
    %c1_i32 = arith.constant 1 : i32
    %17 = tpu.dynamic_rotate %3 by %c1_i32 dim 1 : vector<4x256xf32>, i32 -> vector<4x256xf32>
    %18 = vector.extract_strided_slice %0 {offsets = [3, 0], sizes = [1, 256], strides = [1, 1]} : vector<9x256xf32> to vector<1x256xf32>
    %19 = vector.broadcast %18 : vector<1x256xf32> to vector<4x256xf32>
    %20 = arith.mulf %17, %19 : vector<4x256xf32>
    %c255_i32 = arith.constant 255 : i32
    %21 = tpu.dynamic_rotate %3 by %c255_i32 dim 1 : vector<4x256xf32>, i32 -> vector<4x256xf32>
    %22 = vector.extract_strided_slice %0 {offsets = [5, 0], sizes = [1, 256], strides = [1, 1]} : vector<9x256xf32> to vector<1x256xf32>
    %23 = vector.broadcast %22 : vector<1x256xf32> to vector<4x256xf32>
    %24 = arith.mulf %21, %23 : vector<4x256xf32>
    %c241_i32 = arith.constant 241 : i32
    %25 = tpu.dynamic_rotate %3 by %c241_i32 dim 1 : vector<4x256xf32>, i32 -> vector<4x256xf32>
    %26 = vector.extract_strided_slice %0 {offsets = [6, 0], sizes = [1, 256], strides = [1, 1]} : vector<9x256xf32> to vector<1x256xf32>
    %27 = vector.broadcast %26 : vector<1x256xf32> to vector<4x256xf32>
    %28 = arith.mulf %25, %27 : vector<4x256xf32>
    %c240_i32 = arith.constant 240 : i32
    %29 = tpu.dynamic_rotate %3 by %c240_i32 dim 1 : vector<4x256xf32>, i32 -> vector<4x256xf32>
    %30 = vector.extract_strided_slice %0 {offsets = [7, 0], sizes = [1, 256], strides = [1, 1]} : vector<9x256xf32> to vector<1x256xf32>
    %31 = vector.broadcast %30 : vector<1x256xf32> to vector<4x256xf32>
    %32 = arith.mulf %29, %31 : vector<4x256xf32>
    %c239_i32 = arith.constant 239 : i32
    %33 = tpu.dynamic_rotate %3 by %c239_i32 dim 1 : vector<4x256xf32>, i32 -> vector<4x256xf32>
    %34 = vector.extract_strided_slice %0 {offsets = [8, 0], sizes = [1, 256], strides = [1, 1]} : vector<9x256xf32> to vector<1x256xf32>
    %35 = vector.broadcast %34 : vector<1x256xf32> to vector<4x256xf32>
    %36 = arith.mulf %33, %35 : vector<4x256xf32>
    %37 = tpu.concatenate %8, %12, %16, %20, %3, %24, %28, %32, %36, %1 in 0 : vector<4x256xf32>, vector<4x256xf32>, vector<4x256xf32>, vector<4x256xf32>, vector<4x256xf32>, vector<4x256xf32>, vector<4x256xf32>, vector<4x256xf32>, vector<4x256xf32>, vector<1x256xf32> -> vector<37x256xf32>
    %cst_6 = arith.constant dense<0.000000e+00> : vector<8x256xf32>
    %38 = tpu.matmul %4, %37, %cst_6 {dimension_numbers = #tpu.dot_dimension_numbers<[1], [0], [0], [1], [0, 0, 1, 1], [], []>} : vector<8x37xf32>, vector<37x256xf32>, vector<8x256xf32> -> vector<8x256xf32>
    %cst_7 = arith.constant 0.000000e+00 : f32
    %39 = vector.broadcast %cst_7 : f32 to vector<8x256xf32>
    %40 = arith.maximumf %38, %39 : vector<8x256xf32>
    %c0_8 = arith.constant 0 : index
    %c0_9 = arith.constant 0 : index
    %41 = vector.load %arg4[%c0_8, %c0_9] : memref<8x73xf32, #tpu.memory_space<vmem>>, vector<8x73xf32>
    %c17_i32_10 = arith.constant 17 : i32
    %42 = tpu.dynamic_rotate %40 by %c17_i32_10 dim 1 : vector<8x256xf32>, i32 -> vector<8x256xf32>
    %43 = vector.extract_strided_slice %0 {offsets = [0, 0], sizes = [1, 256], strides = [1, 1]} : vector<9x256xf32> to vector<1x256xf32>
    %44 = vector.broadcast %43 : vector<1x256xf32> to vector<8x256xf32>
    %45 = arith.mulf %42, %44 : vector<8x256xf32>
    %c16_i32_11 = arith.constant 16 : i32
    %46 = tpu.dynamic_rotate %40 by %c16_i32_11 dim 1 : vector<8x256xf32>, i32 -> vector<8x256xf32>
    %47 = vector.extract_strided_slice %0 {offsets = [1, 0], sizes = [1, 256], strides = [1, 1]} : vector<9x256xf32> to vector<1x256xf32>
    %48 = vector.broadcast %47 : vector<1x256xf32> to vector<8x256xf32>
    %49 = arith.mulf %46, %48 : vector<8x256xf32>
    %c15_i32_12 = arith.constant 15 : i32
    %50 = tpu.dynamic_rotate %40 by %c15_i32_12 dim 1 : vector<8x256xf32>, i32 -> vector<8x256xf32>
    %51 = vector.extract_strided_slice %0 {offsets = [2, 0], sizes = [1, 256], strides = [1, 1]} : vector<9x256xf32> to vector<1x256xf32>
    %52 = vector.broadcast %51 : vector<1x256xf32> to vector<8x256xf32>
    %53 = arith.mulf %50, %52 : vector<8x256xf32>
    %c1_i32_13 = arith.constant 1 : i32
    %54 = tpu.dynamic_rotate %40 by %c1_i32_13 dim 1 : vector<8x256xf32>, i32 -> vector<8x256xf32>
    %55 = vector.extract_strided_slice %0 {offsets = [3, 0], sizes = [1, 256], strides = [1, 1]} : vector<9x256xf32> to vector<1x256xf32>
    %56 = vector.broadcast %55 : vector<1x256xf32> to vector<8x256xf32>
    %57 = arith.mulf %54, %56 : vector<8x256xf32>
    %c255_i32_14 = arith.constant 255 : i32
    %58 = tpu.dynamic_rotate %40 by %c255_i32_14 dim 1 : vector<8x256xf32>, i32 -> vector<8x256xf32>
    %59 = vector.extract_strided_slice %0 {offsets = [5, 0], sizes = [1, 256], strides = [1, 1]} : vector<9x256xf32> to vector<1x256xf32>
    %60 = vector.broadcast %59 : vector<1x256xf32> to vector<8x256xf32>
    %61 = arith.mulf %58, %60 : vector<8x256xf32>
    %c241_i32_15 = arith.constant 241 : i32
    %62 = tpu.dynamic_rotate %40 by %c241_i32_15 dim 1 : vector<8x256xf32>, i32 -> vector<8x256xf32>
    %63 = vector.extract_strided_slice %0 {offsets = [6, 0], sizes = [1, 256], strides = [1, 1]} : vector<9x256xf32> to vector<1x256xf32>
    %64 = vector.broadcast %63 : vector<1x256xf32> to vector<8x256xf32>
    %65 = arith.mulf %62, %64 : vector<8x256xf32>
    %c240_i32_16 = arith.constant 240 : i32
    %66 = tpu.dynamic_rotate %40 by %c240_i32_16 dim 1 : vector<8x256xf32>, i32 -> vector<8x256xf32>
    %67 = vector.extract_strided_slice %0 {offsets = [7, 0], sizes = [1, 256], strides = [1, 1]} : vector<9x256xf32> to vector<1x256xf32>
    %68 = vector.broadcast %67 : vector<1x256xf32> to vector<8x256xf32>
    %69 = arith.mulf %66, %68 : vector<8x256xf32>
    %c239_i32_17 = arith.constant 239 : i32
    %70 = tpu.dynamic_rotate %40 by %c239_i32_17 dim 1 : vector<8x256xf32>, i32 -> vector<8x256xf32>
    %71 = vector.extract_strided_slice %0 {offsets = [8, 0], sizes = [1, 256], strides = [1, 1]} : vector<9x256xf32> to vector<1x256xf32>
    %72 = vector.broadcast %71 : vector<1x256xf32> to vector<8x256xf32>
    %73 = arith.mulf %70, %72 : vector<8x256xf32>
    %74 = tpu.concatenate %45, %49, %53, %57, %40, %61, %65, %69, %73, %1 in 0 : vector<8x256xf32>, vector<8x256xf32>, vector<8x256xf32>, vector<8x256xf32>, vector<8x256xf32>, vector<8x256xf32>, vector<8x256xf32>, vector<8x256xf32>, vector<8x256xf32>, vector<1x256xf32> -> vector<73x256xf32>
    %cst_18 = arith.constant dense<0.000000e+00> : vector<8x256xf32>
    %75 = tpu.matmul %41, %74, %cst_18 {dimension_numbers = #tpu.dot_dimension_numbers<[1], [0], [0], [1], [0, 0, 1, 1], [], []>} : vector<8x73xf32>, vector<73x256xf32>, vector<8x256xf32> -> vector<8x256xf32>
    %cst_19 = arith.constant 0.000000e+00 : f32
    %76 = vector.broadcast %cst_19 : f32 to vector<8x256xf32>
    %77 = arith.maximumf %75, %76 : vector<8x256xf32>
    %c0_20 = arith.constant 0 : index
    %c0_21 = arith.constant 0 : index
    %c0_22 = arith.constant 0 : index
    %78 = vector.load %arg5[%c0_20, %c0_21, %c0_22] : memref<1x8x256xf32, #tpu.memory_space<vmem>>, vector<1x8x256xf32>
    %79 = vector.shape_cast %78 : vector<1x8x256xf32> to vector<8x256xf32>
    %80 = vector.shape_cast %77 : vector<8x256xf32> to vector<1x8x256xf32>
    tpu.vector_store %arg5[%c0_20, %c0_21, %c0_22], %80 {strides = array<i32>} : memref<1x8x256xf32, #tpu.memory_space<vmem>>, vector<1x8x256xf32>,
    return
  }
  func.func @transform_0(%arg0: i32) -> (i32, i32) {
    %c0_i32 = arith.constant 0 : i32
    %c0_i32_0 = arith.constant 0 : i32
    %c0_i32_1 = arith.constant 0 : i32
    return %c0_i32, %c0_i32_0 : i32, i32
  }
  func.func @transform_1(%arg0: i32) -> (i32, i32, i32) {
    %c0_i32 = arith.constant 0 : i32
    %c0_i32_0 = arith.constant 0 : i32
    %c0_i32_1 = arith.constant 0 : i32
    return %arg0, %c0_i32, %c0_i32_0 : i32, i32, i32
  }
  func.func @transform_2(%arg0: i32) -> (i32, i32) {
    %c0_i32 = arith.constant 0 : i32
    %c0_i32_0 = arith.constant 0 : i32
    %c0_i32_1 = arith.constant 0 : i32
    return %c0_i32, %c0_i32_0 : i32, i32
  }
  func.func @transform_3(%arg0: i32) -> (i32, i32) {
    %c0_i32 = arith.constant 0 : i32
    %c0_i32_0 = arith.constant 0 : i32
    %c0_i32_1 = arith.constant 0 : i32
    return %c0_i32, %c0_i32_0 : i32, i32
  }
  func.func @transform_4(%arg0: i32) -> (i32, i32, i32) {
    %c0_i32 = arith.constant 0 : i32
    %c0_i32_0 = arith.constant 0 : i32
    %c0_i32_1 = arith.constant 0 : i32
    return %arg0, %c0_i32, %c0_i32_0 : i32, i32, i32
  }
}

</mosaic_0001>

<bundles_post_ra>
// kernel: decoder_conv_forward.1
= control target key start
LH: loop header
LB: loop body
LE: loop exit
PB: predicated region body
PF: predicated region fallthrough
CT: control target
= control target key end

     0   :  { %s682_s15 = smov 0   ;;  %s925_s0 = inlined_call_operand.vmem [shape: f32[9,256], index: 0, kind: input, shape index: {}]   ;;  %s926_s1 = inlined_call_operand.vmem [shape: f32[2,4,256], index: 1, kind: input, shape index: {}]   ;;  %s927_s2 = inlined_call_operand.vmem [shape: f32[8,37], index: 2, kind: input, shape index: {}]   ;;  %s928_s3 = inlined_call_operand.vmem [shape: f32[8,73], index: 3, kind: input, shape index: {}]   ;;  %s929_s4 = inlined_call_operand.vmem [shape: f32[2,8,256], index: 4, kind: output, shape index: {}]  }
   0x1 LB: > { %s600_s16 = sadd.s32 4294967295, %s646_s15   ;;  %p604_p0 = scmp.ge.s32.totalorder %s646_s15, 1  ;;  %s646_s15 = sphi %s682_s15, %s14_s15  }
   0x2   : > { %p162_p1 = scmp.lt.s32.totalorder %s646_s15, 3 }
   0x4   : > { %p163_p2 = pnand %p604_p0, %p162_p1 }
   0x5   : > { %p188_p3 = scmp.lt.s32.totalorder (!%p163_p2), %s600_s16, 1  ;;  %s648_s21 = smov (!%p163_p2), 16  }
   0x6   : > { %166 = sbr.rel (%p163_p2) target bundleno = 641 (0x281), region = 36  ;;  %s649_s22 = smov (!%p163_p2), 15  }
   0x7   : > { %s650_s23 = smov (!%p163_p2), 1   ;;  %s651_s24 = smov (!%p163_p2), 127  }
   0x8   : > { %s652_s25 = smov (!%p163_p2), 113   ;;  %s653_s26 = smov (!%p163_p2), 112  }
   0x9   : > { %s654_s27 = smov (!%p163_p2), 17   ;;  %s655_s28 = smov (!%p163_p2), 111  }
   0xb   : > { %s931_s16 = smov (!%p188_p3, %s600_s16), 1  ;;  %v214_v25 = vlaneseq  ;;  %v720_v28 = vld [vmem:[%s925_s0] sm:$0xff]  ;;  %v727_v33 = vld [vmem:[%s925_s0 + $0x8] sm:$0xff]  ;;  %v758_v49 = vld [vmem:[%s925_s0 + $0x10] ss:$0 sm:$0xff]  ;;  %vm379_vm6 = vcmask 1044480  }
   0xc   : > { %s619_s17 = sshll.u32 %s931_s16, 3  ;;  %v283_v30 = vperm.slane %v720_v28, 5  ;;  %v315_v35 = vperm.slane %v720_v28, 7  ;;  %v316_v36 = vperm.slane %v727_v33, 7  ;;  %v235_v37 = vperm.slane %v720_v28, 1 }
   0xd   : > { %s192_s20 = scalar_lea.vmem %s926_s1, %s619_s17  ;;  %v714_v27 = vand.u32 127, %v214_v25  ;;  %v284_v38 = vperm.slane %v727_v33, 5  ;;  %v236_v41 = vperm.slane %v727_v33, 1  ;;  %v267_v44 = vperm.slane %v720_v28, 3  ;;  %v763_v50 = vld [vmem:[%s925_s0 + $0x18] ss:$0 sm:$0xff] }
   0xe   : > { %v202_v0 = vld [vmem:[%s192_s20] sm:$0xff]  ;;  %v268_v45 = vperm.slane %v727_v33, 3  ;;  %v299_v46 = vperm.slane %v720_v28, 6  ;;  %v300_v53 = vperm.slane %v727_v33, 6  ;;  %vm364_vm8 = vcmask 1043456   ;;  %s620_s17 = sshll.u32 %s931_s16, 4 }
   0xf   : > { %205 = vst [vmem:[#allocation1] ss:$2 sm:$0xff] %v202_v0  ;;  %vm280_vm0 = vcmp.lt.s32.totalorder %v714_v27, 127  ;;  %vm312_vm1 = vcmp.lt.s32.totalorder %v714_v27, 112  ;;  %vm232_vm2 = vcmp.lt.s32.totalorder %v714_v27, 16  ;;  %vm264_vm3 = vcmp.lt.s32.totalorder %v714_v27, 1  ;;  %s197_s20 = scalar_lea.vmem %s929_s4, %s620_s17 }
  0x10   : > { %vm296_vm4 = vcmp.lt.s32.totalorder %v714_v27, 113  ;;  %vm328_vm5 = vcmp.lt.s32.totalorder %v714_v27, 111  ;;  %vm216_vm7 = vcmp.lt.s32.totalorder %v714_v27, 17  ;;  %vm248_vm9 = vcmp.lt.s32.totalorder %v714_v27, 15 }
  0x11   : > { %vm375_vm10 = vcmask 302080   ;;  %vm497_vm11 = vcmask 1040384   ;;  %vm493_vm12 = vcmask 596992  }
  0x16   : > { %v206_v1 = vld.sshfl [vmem:[#allocation1] sm:$0xff pattern:$0x75316420]  ;;  %v207_v2 = vld.sshfl [vmem:[#allocation1 + $0x8] sm:$0xff pattern:$0x75316420] }
  0x17   : > { %223 = vst [vmem:[#allocation1] ss:$2 sm:$0xff] %v202_v0 }
  0x1e   : > { %v224_v3 = vld.sshfl [vmem:[#allocation1] sm:$0xff pattern:$0x75316420]  ;;  %v225_v4 = vld.sshfl [vmem:[#allocation1 + $0x8] sm:$0xff pattern:$0x75316420] }
  0x1f   : > { %239 = vst [vmem:[#allocation1] ss:$2 sm:$0xff] %v202_v0  ;;  %228 = vrot.lane.b32.xlu1 %v224_v3, %s648_s21  ;;  %230 = vrot.lane.b32.xlu2 %v225_v4, %s648_s21 }
  0x26   : > { %v240_v5 = vld.sshfl [vmem:[#allocation1] sm:$0xff pattern:$0x75316420]  ;;  %v241_v6 = vld.sshfl [vmem:[#allocation1 + $0x8] sm:$0xff pattern:$0x75316420] }
  0x27   : > { %244 = vrot.lane.b32.xlu0 %v240_v5, %s649_s22  ;;  %255 = vst [vmem:[#allocation1] ss:$2 sm:$0xff] %v202_v0 }
  0x2e   : > { %v257_v7 = vld.sshfl [vmem:[#allocation1 + $0x8] sm:$0xff pattern:$0x75316420]  ;;  %v256_v8 = vld.sshfl [vmem:[#allocation1] sm:$0xff pattern:$0x75316420] }
  0x2f   : > { %262 = vrot.lane.b32.xlu0 %v257_v7, %s650_s23  ;;  %271 = vst [vmem:[#allocation1] ss:$2 sm:$0xff] %v202_v0  ;;  %260 = vrot.lane.b32.xlu2 %v256_v8, %s650_s23 }
  0x36   : > { %v272_v9 = vld.sshfl [vmem:[#allocation1] sm:$0xff pattern:$0x75316420]  ;;  %v273_v10 = vld.sshfl [vmem:[#allocation1 + $0x8] sm:$0xff pattern:$0x75316420] }
  0x37   : > { %287 = vst [vmem:[#allocation1] ss:$2 sm:$0xff] %v202_v0  ;;  %276 = vrot.lane.b32.xlu2 %v272_v9, %s651_s24 }
  0x3e   : > { %v288_v11 = vld.sshfl [vmem:[#allocation1] sm:$0xff pattern:$0x75316420]  ;;  %v289_v12 = vld.sshfl [vmem:[#allocation1 + $0x8] sm:$0xff pattern:$0x75316420] }
  0x3f   : > { %292 = vrot.lane.b32.xlu0 %v288_v11, %s652_s25  ;;  %294 = vrot.lane.b32.xlu1 %v289_v12, %s652_s25  ;;  %303 = vst [vmem:[#allocation1] ss:$2 sm:$0xff] %v202_v0 }
  0x40   : > { %278 = vrot.lane.b32.xlu2 %v273_v10, %s651_s24 }
  0x46   : > { %v304_v13 = vld.sshfl [vmem:[#allocation1] sm:$0xff pattern:$0x75316420]  ;;  %v305_v14 = vld.sshfl [vmem:[#allocation1 + $0x8] sm:$0xff pattern:$0x75316420] }
  0x47   : > { %308 = vrot.lane.b32.xlu0 %v304_v13, %s653_s26  ;;  %319 = vst [vmem:[#allocation1] ss:$2 sm:$0xff] %v202_v0  ;;  %v219_v13 = vperm.slane %v720_v28, 0 }
  0x48   : > { %210 = vrot.lane.b32.xlu2 %v206_v1, %s654_s27 }
  0x4e   : > { %v320_v15 = vld.sshfl [vmem:[#allocation1] sm:$0xff pattern:$0x75316420]  ;;  %v321_v16 = vld.sshfl [vmem:[#allocation1 + $0x8] sm:$0xff pattern:$0x75316420] }
  0x4f   : > { %310 = vrot.lane.b32.xlu0 %v305_v14, %s653_s26  ;;  %324 = vrot.lane.b32.xlu1 %v320_v15, %s655_s28  ;;  %347 = vst [vmem:[#allocation1] ss:$2 sm:$0xff] %v202_v0  ;;  %v220_v14 = vperm.slane %v727_v33, 0 }
  0x56   : > { %v348_v11 = vld.sshfl [vmem:[#allocation1] sm:$0xff pattern:$0x75316420]  ;;  %v349_v15 = vld.sshfl [vmem:[#allocation1 + $0x8] sm:$0xff pattern:$0x75316420] }
  0x57   : > { %212 = vrot.lane.b32.xlu0 %v207_v2, %s654_s27  ;;  %326 = vrot.lane.b32.xlu1 %v321_v16, %s655_s28 }
  0x5f   : > { %246 = vrot.lane.b32.xlu1 %v241_v6, %s649_s22 }
  0x79   : > { %v231_v18 = vpop.permute.xlu2 %230 }
  0x89   : > { %v261_v20 = vpop.permute.xlu2 %260 }
  0x91   : > { %v229_v21 = vpop.permute.xlu1 %228  ;;  %v277_v23 = vpop.permute.xlu2 %276 }
  0x92   : > { %v233_v51 = vsel %vm232_vm2, %v229_v21, %v231_v18  ;;  %v234_v52 = vsel %vm232_vm2, %v231_v18, %v229_v21 }
  0x99   : > { %v712_v17 = vpop.permute.xlu0 %244 }
  0x9a   : > { %v279_v29 = vpop.permute.xlu2 %278 }
  0x9b   : > { %v281_v34 = vsel %vm280_vm0, %v277_v23, %v279_v29  ;;  %v282_v42 = vsel %vm280_vm0, %v279_v29, %v277_v23  ;;  %v237_v23 = vmul.f32 %v235_v37, %v234_v52 }
  0x9c   : > { %v285_v43 = vmul.f32 %v283_v30, %v281_v34  ;;  %v286_v54 = vmul.f32 %v284_v38, %v282_v42 }
  0x9e   : > { %v354_v57 = vrot.slane %v285_v43, 4  ;;  %v355_v4 = vrot.slane %v286_v54, 4  ;;  %v203_v54 = vld [vmem:[%s927_s2] sm:$0xff] }
  0xa0   : > { %v370_v29 = vsel %vm364_vm8, %v349_v15, %v355_v4 }
  0xa1   : > { %v263_v19 = vpop.permute.xlu0 %262 }
  0xa2   : > { %v265_v55 = vsel %vm264_vm3, %v261_v20, %v263_v19  ;;  %v266_v56 = vsel %vm264_vm3, %v263_v19, %v261_v20  ;;  %v211_v7 = vpop.permute.xlu2 %210  ;;  %v251_v19 = vperm.slane %v720_v28, 2  ;;  %v252_v20 = vperm.slane %v727_v33, 2 }
  0xa3   : > { %v269_v3 = vmul.f32 %v267_v44, %v266_v56  ;;  %v270_v12 = vmul.f32 %v268_v45, %v265_v55 }
  0xb1   : > { %v293_v22 = vpop.permute.xlu0 %292  ;;  %v295_v24 = vpop.permute.xlu1 %294 }
  0xb2   : > { %v297_v59 = vsel %vm296_vm4, %v293_v22, %v295_v24  ;;  %v298_v60 = vsel %vm296_vm4, %v295_v24, %v293_v22  ;;  %v238_v24 = vmul.f32 %v236_v41, %v233_v51 }
  0xb3   : > { %v301_v5 = vmul.f32 %v299_v46, %v297_v59  ;;  %v302_v6 = vmul.f32 %v300_v53, %v298_v60 }
  0xb4   : > { %v338_v51 = vrot.slane %v238_v24, 4 }
  0xb9   : > { %v309_v26 = vpop.permute.xlu0 %308 }
  0xc1   : > { %v311_v31 = vpop.permute.xlu0 %310  ;;  %v325_v32 = vpop.permute.xlu1 %324 }
  0xc2   : > { %v313_v39 = vsel %vm312_vm1, %v309_v26, %v311_v31  ;;  %v314_v40 = vsel %vm312_vm1, %v311_v31, %v309_v26  ;;  %v369_v26 = vsel %vm364_vm8, %v348_v11, %v354_v57  ;;  %v343_v31 = vrot.slane %v269_v3, 4 }
  0xc3   : > { %v317_v47 = vmul.f32 %v315_v35, %v313_v39  ;;  %v318_v48 = vmul.f32 %v316_v36, %v314_v40 }
  0xc5   : > { %v360_v63 = vrot.slane %v317_v47, 4  ;;  %v361_v0 = vrot.slane %v318_v48, 4  ;;  %v337_v48 = vrot.slane %v237_v23, 4 }
  0xc7   : > { %v371_v16 = vsel %vm364_vm8, %v301_v5, %v360_v63  ;;  %v372_v18 = vsel %vm364_vm8, %v302_v6, %v361_v0 }
  0xc9   : > { %v327_v58 = vpop.permute.xlu1 %326  ;;  %v213_v8 = vpop.permute.xlu0 %212 }
  0xca   : > { %v329_v61 = vsel %vm328_vm5, %v325_v32, %v327_v58  ;;  %v330_v62 = vsel %vm328_vm5, %v327_v58, %v325_v32  ;;  %v217_v21 = vsel %vm216_vm7, %v211_v7, %v213_v8  ;;  %v218_v22 = vsel %vm216_vm7, %v213_v8, %v211_v7 }
  0xcb   : > { %v333_v1 = vmul.f32 %v758_v49, %v329_v61  ;;  %v334_v2 = vmul.f32 %v763_v50, %v330_v62  ;;  %v344_v32 = vrot.slane %v270_v12, 4  ;;  %v221_v40 = vmul.f32 %v219_v13, %v218_v22 }
  0xcc   : > { %v222_v42 = vmul.f32 %v220_v14, %v217_v21  ;;  %v656_v61 = vmov 1.0  }
  0xcd   : > { %v373_v9 = vsel %vm364_vm8, %v333_v1, 1.0  ;;  %v374_v10 = vsel %vm364_vm8, %v334_v2, 1.0  ;;  %v365_v55 = vsel %vm364_vm8, %v221_v40, %v337_v48  ;;  %613 = vmatpush.msk.msra.mxu2 %vm497_vm11, %v656_v61  ;;  %615 = vmatpush.msk.msra.mxu3 %vm497_vm11, %v656_v61 }
  0xce   : > { %609 = vmatpush.msk.msra.mxu0 %vm379_vm6, %v373_v9  ;;  %611 = vmatpush.msk.msra.mxu1 %vm379_vm6, %v374_v10  ;;  %v366_v56 = vsel %vm364_vm8, %v222_v42, %v338_v51 }
  0xd0   : > { %398 = vmatpush.msra.mxu0 %v371_v16  ;;  %418 = vmatpush.msra.mxu1 %v372_v18 }
  0xd1   : > { %v247_v25 = vpop.permute.xlu1 %246 }
  0xd2   : > { %v249_v34 = vsel %vm248_vm9, %v712_v17, %v247_v25  ;;  %v250_v39 = vsel %vm248_vm9, %v247_v25, %v712_v17  ;;  %399 = vmatpush.msra.mxu0 %v369_v26  ;;  %419 = vmatpush.msra.mxu1 %v370_v29 }
  0xd3   : > { %v253_v43 = vmul.f32 %v251_v19, %v250_v39  ;;  %v254_v47 = vmul.f32 %v252_v20, %v249_v34 }
  0xd5   : > { %v367_v52 = vsel %vm364_vm8, %v253_v43, %v343_v31  ;;  %v368_v17 = vsel %vm364_vm8, %v254_v47, %v344_v32 }
  0xd6   : > { %400 = vmatpush.msra.mxu0 %v367_v52  ;;  %420 = vmatpush.msra.mxu1 %v368_v17 }
  0xd8   : > { %401 = vmatpush.msra.mxu0 %v365_v55  ;;  %421 = vmatpush.msra.mxu1 %v366_v56 }
  0xd9   : > { %610 = vmatmul.msk.f32.vlgmr.msra.gmra.mxu0 %vm375_vm10, %v203_v54  ;;  %612 = vmatmul.msk.f32.vlgmr.msra.gmra.mxu1 %vm375_vm10, %v203_v54 }
 0x156   : > { %v403_v57 = vpop.f32.mrf.mxu0  ;;  %v423_v58 = vpop.f32.mrf.mxu1 }
 0x157   : > { %v426_v59 = vmax.f32 %v403_v57, 0.0  ;;  %v427_v60 = vmax.f32 %v423_v58, 0.0 }
 0x159   : > { %487 = vrot.lane.b32.xlu2 %v427_v60, %s655_s28  ;;  %477 = vrot.lane.b32.xlu0 %v426_v59, %s653_s26 }
 0x15a   : > { %485 = vrot.lane.b32.xlu1 %v426_v59, %s655_s28 }
 0x161   : > { %469 = vrot.lane.b32.xlu2 %v426_v59, %s652_s25  ;;  %471 = vrot.lane.b32.xlu0 %v427_v60, %s652_s25 }
 0x162   : > { %479 = vrot.lane.b32.xlu1 %v427_v60, %s653_s26 }
 0x169   : > { %463 = vrot.lane.b32.xlu2 %v427_v60, %s651_s24  ;;  %453 = vrot.lane.b32.xlu0 %v426_v59, %s650_s23 }
 0x16a   : > { %461 = vrot.lane.b32.xlu1 %v426_v59, %s651_s24 }
 0x171   : > { %445 = vrot.lane.b32.xlu2 %v426_v59, %s649_s22  ;;  %447 = vrot.lane.b32.xlu0 %v427_v60, %s649_s22 }
 0x172   : > { %455 = vrot.lane.b32.xlu1 %v427_v60, %s650_s23 }
 0x179   : > { %439 = vrot.lane.b32.xlu2 %v427_v60, %s648_s21  ;;  %429 = vrot.lane.b32.xlu0 %v426_v59, %s654_s27 }
 0x17a   : > { %437 = vrot.lane.b32.xlu1 %v426_v59, %s648_s21 }
 0x182   : > { %431 = vrot.lane.b32.xlu1 %v427_v60, %s654_s27 }
 0x1b3   : > { %v488_v62 = vpop.permute.xlu2 %487 }
 0x1bb   : > { %v470_v3 = vpop.permute.xlu2 %469 }
 0x1c3   : > { %v464_v12 = vpop.permute.xlu2 %463 }
 0x1cb   : > { %v478_v63 = vpop.permute.xlu0 %477 }
 0x1cc   : > { %v486_v0 = vpop.permute.xlu1 %485 }
 0x1cd   : > { %v489_v1 = vsel %vm328_vm5, %v486_v0, %v488_v62  ;;  %v490_v2 = vsel %vm328_vm5, %v488_v62, %v486_v0 }
 0x1ce   : > { %v491_v4 = vmul.f32 %v758_v49, %v489_v1  ;;  %v492_v5 = vmul.f32 %v763_v50, %v490_v2 }
 0x1d0   : > { %508 = vmatpush.msra.mxu2 %v491_v4  ;;  %528 = vmatpush.msra.mxu3 %v492_v5 }
 0x1d3   : > { %v472_v6 = vpop.permute.xlu0 %471 }
 0x1d4   : > { %v480_v7 = vpop.permute.xlu1 %479  ;;  %v473_v8 = vsel %vm296_vm4, %v470_v3, %v472_v6  ;;  %v474_v9 = vsel %vm296_vm4, %v472_v6, %v470_v3 }
 0x1d5   : > { %v481_v10 = vsel %vm312_vm1, %v478_v63, %v480_v7  ;;  %v482_v11 = vsel %vm312_vm1, %v480_v7, %v478_v63  ;;  %v475_v15 = vmul.f32 %v473_v8, %v299_v46  ;;  %v476_v16 = vmul.f32 %v474_v9, %v300_v53  ;;  %v446_v46 = vpop.permute.xlu2 %445 }
 0x1d6   : > { %v483_v49 = vmul.f32 %v481_v10, %v315_v35  ;;  %v484_v50 = vmul.f32 %v482_v11, %v316_v36 }
 0x1d8   : > { %509 = vmatpush.msra.mxu2 %v483_v49  ;;  %529 = vmatpush.msra.mxu3 %v484_v50 }
 0x1da   : > { %510 = vmatpush.msra.mxu2 %v475_v15  ;;  %530 = vmatpush.msra.mxu3 %v476_v16 }
 0x1db   : > { %v454_v18 = vpop.permute.xlu0 %453 }
 0x1dc   : > { %v462_v21 = vpop.permute.xlu1 %461 }
 0x1dd   : > { %v465_v22 = vsel %vm280_vm0, %v462_v21, %v464_v12  ;;  %v466_v35 = vsel %vm280_vm0, %v464_v12, %v462_v21  ;;  %v440_v39 = vpop.permute.xlu2 %439 }
 0x1de   : > { %v467_v36 = vmul.f32 %v465_v22, %v283_v30  ;;  %v468_v23 = vmul.f32 %v466_v35, %v284_v38 }
 0x1e0   : > { %511 = vmatpush.msra.mxu2 %v467_v36  ;;  %531 = vmatpush.msra.mxu3 %v468_v23 }
 0x1e2   : > { %512 = vmatpush.msra.mxu2 %v426_v59  ;;  %532 = vmatpush.msra.mxu3 %v427_v60 }
 0x1e3   : > { %v448_v53 = vpop.permute.xlu0 %447 }
 0x1e4   : > { %v456_v24 = vpop.permute.xlu1 %455  ;;  %v449_v25 = vsel %vm248_vm9, %v446_v46, %v448_v53  ;;  %v450_v26 = vsel %vm248_vm9, %v448_v53, %v446_v46 }
 0x1e5   : > { %v457_v29 = vsel %vm264_vm3, %v454_v18, %v456_v24  ;;  %v458_v30 = vsel %vm264_vm3, %v456_v24, %v454_v18  ;;  %v451_v32 = vmul.f32 %v450_v26, %v251_v19  ;;  %v452_v34 = vmul.f32 %v449_v25, %v252_v20 }
 0x1e6   : > { %v459_v38 = vmul.f32 %v458_v30, %v267_v44  ;;  %v460_v31 = vmul.f32 %v457_v29, %v268_v45 }
 0x1e8   : > { %513 = vmatpush.msra.mxu2 %v459_v38  ;;  %533 = vmatpush.msra.mxu3 %v460_v31 }
 0x1ea   : > { %514 = vmatpush.msra.mxu2 %v451_v32  ;;  %534 = vmatpush.msra.mxu3 %v452_v34 }
 0x1eb   : > { %v430_v20 = vpop.permute.xlu0 %429 }
 0x1ec   : > { %v438_v40 = vpop.permute.xlu1 %437 }
 0x1ed   : > { %v441_v42 = vsel %vm232_vm2, %v438_v40, %v440_v39  ;;  %v442_v44 = vsel %vm232_vm2, %v440_v39, %v438_v40 }
 0x1ee   : > { %v443_v45 = vmul.f32 %v442_v44, %v235_v37  ;;  %v444_v19 = vmul.f32 %v441_v42, %v236_v41  ;;  %v428_v41 = vld [vmem:[%s928_s3] sm:$0xff] }
 0x1f0   : > { %515 = vmatpush.msra.mxu2 %v443_v45  ;;  %535 = vmatpush.msra.mxu3 %v444_v19 }
 0x1f4   : > { %v432_v43 = vpop.permute.xlu1 %431 }
 0x1f5   : > { %v433_v47 = vsel %vm216_vm7, %v430_v20, %v432_v43  ;;  %v434_v48 = vsel %vm216_vm7, %v432_v43, %v430_v20 }
 0x1f6   : > { %v435_v51 = vmul.f32 %v434_v48, %v219_v13  ;;  %v436_v37 = vmul.f32 %v433_v47, %v220_v14 }
 0x1f8   : > { %516 = vmatpush.msra.mxu2 %v435_v51  ;;  %536 = vmatpush.msra.mxu3 %v436_v37 }
 0x1f9   : > { %614 = vmatmul.msk.f32.vlgmr.msra.gmra.mxu2 %vm493_vm12, %v428_v41  ;;  %616 = vmatmul.msk.f32.vlgmr.msra.gmra.mxu3 %vm493_vm12, %v428_v41 }
 0x27c   : > { %v518_v27 = vpop.f32.mrf.mxu2  ;;  %v538_v28 = vpop.f32.mrf.mxu3 }
 0x27d   : > { %v541_v13 = vmax.f32 %v518_v27, 0.0  ;;  %v542_v52 = vmax.f32 %v538_v28, 0.0 }
 0x27f   : > { %543 = vst [vmem:[%s197_s20] sm:$0xff] %v541_v13 }
 0x280   : > { %544 = vst [vmem:[%s197_s20 + $0x8] sm:$0xff] %v542_v52 }
 0x281 PF: > { %s14_s15 = sadd.s32 1, %s646_s15  }
 0x282   : > { %p11_p4 = scmp.ge.s32.totalorder %s14_s15, 4  }
 0x284   :  { %13 = sbr.rel (!%p11_p4) target bundleno = 1 (0x1), region = 66 }

</bundles_post_ra>
